<compile_context>
chip_gen: v7x
topology: tpu7x:2x2x1
jax: 0.10.0
libtpu: 0.0.40
codegen_flags: <defaults>
</compile_context>

<pallas_src>
import jax
import jax.numpy as jnp
from jax.experimental import pallas as pl
from jax.experimental.pallas import tpu as pltpu


def _round_up(x, m):
    return ((x + m - 1) // m) * m


# ------------------------------ Pallas kernel -------------------------------

def _denorm_kernel(x_ref, s_ref, m_ref, o_ref):
    # (tm, L) * (tm, 1) - (tm, 1)  -> per-row scale/shift broadcast over lanes.
    o_ref[...] = x_ref[...] * s_ref[...] - m_ref[...]


def _pick_row_tile(rows_padded, lanes, itemsize):
    """Largest multiple-of-8 row tile that divides rows_padded and fits VMEM."""
    budget = 24 << 20  # leave headroom under the 32 MiB scoped-VMEM default (all gens)
    # per row of a step: x tile + out tile (each double buffered) + padded scale/shift
    per_row = max(1, (2 * lanes + 2 * 128) * itemsize * 2)
    rows = max(8, budget // per_row)
    tm = max(8, min(rows_padded, (rows // 8) * 8))
    while rows_padded % tm:
        tm -= 8
    return tm


def _denormalize_rows(x2, scale_rows, shift_rows):
    """y = x2 * scale_rows - shift_rows, x2: (R, L), scale/shift: (R, 1)."""
    R, L = x2.shape
    Rp = _round_up(R, 8)
    if Rp != R:
        # rare fallback (R = prod(leading dims)*C not a multiple of 8)
        x2 = jnp.pad(x2, ((0, Rp - R), (0, 0)))
        scale_rows = jnp.pad(scale_rows, ((0, Rp - R), (0, 0)), constant_values=1.0)
        shift_rows = jnp.pad(shift_rows, ((0, Rp - R), (0, 0)))
    tm = _pick_row_tile(Rp, L, x2.dtype.itemsize)

    out = pl.pallas_call(
        _denorm_kernel,
        out_shape=jax.ShapeDtypeStruct((Rp, L), x2.dtype),
        grid=(Rp // tm,),
        in_specs=[
            pl.BlockSpec((tm, L), lambda i: (i, 0)),
            pl.BlockSpec((tm, 1), lambda i: (i, 0)),
            pl.BlockSpec((tm, 1), lambda i: (i, 0)),
        ],
        out_specs=pl.BlockSpec((tm, L), lambda i: (i, 0)),
        compiler_params=pltpu.CompilerParams(
            dimension_semantics=("parallel",),
        ),
    )(x2, scale_rows, shift_rows)

    return out[:R] if Rp != R else out


# ------------------------------- public API ---------------------------------

def denormalize(x, mean, std, channels_axis=1):
    """Matches DeNormalize.forward: x * std - mean with per-channel mean/std.

    Default PyTorch config: ndim=4 (NCHW), channels_axis=1.  General ndim /
    channels_axis are handled by collapsing leading dims into rows and trailing
    dims into lanes (a view, no data movement for contiguous NCHW input).
    """
    shape = x.shape
    c = shape[channels_axis]
    lead = 1
    for d in shape[:channels_axis]:
        lead *= d
    trail = 1
    for d in shape[channels_axis + 1:]:
        trail *= d

    x2 = x.reshape(lead * c, trail)
    scale = jnp.tile(std.reshape(c).astype(x.dtype), (lead,)).reshape(lead * c, 1)
    shift = jnp.tile(mean.reshape(c).astype(x.dtype), (lead,)).reshape(lead * c, 1)

    y2 = _denormalize_rows(x2, scale, shift)
    return y2.reshape(shape)


if __name__ == "__main__":
    key = jax.random.PRNGKey(0)
    # Small CIFAR-like shapes: batch=2, channels=4, spatial=16x16.
    x = jax.random.normal(key, (2, 4, 16, 16), jnp.float32)
    mean = jnp.array([0.485, 0.456, 0.406, 0.5], jnp.float32)
    std = jnp.array([0.229, 0.224, 0.225, 0.25], jnp.float32)

    fwd = jax.jit(denormalize)
    out = fwd(x, mean, std)
    jax.block_until_ready(out)

    # reference: exactly the module's forward, x * std - mean (per-channel broadcast)
    ref = x * std.reshape(1, -1, 1, 1) - mean.reshape(1, -1, 1, 1)
    assert out.shape == x.shape and out.dtype == x.dtype
    assert jnp.allclose(out, ref, atol=1e-6, rtol=1e-6)
    print("KERNEL_OK")
</pallas_src>

<mosaic_0001>
module attributes {stable_mosaic.version = 11 : i64} {
  func.func @_denorm_kernel(%arg0: i32, %arg1: memref<8x256xf32, #tpu.memory_space<vmem>>, %arg2: memref<8x1xf32, #tpu.memory_space<vmem>>, %arg3: memref<8x1xf32, #tpu.memory_space<vmem>>, %arg4: memref<8x256xf32, #tpu.memory_space<vmem>>) attributes {dimension_semantics = [#tpu.dimension_semantics<parallel>], iteration_bounds = array<i64: 1>, scalar_prefetch = 0 : i64, scratch_operands = 0 : i64, tpu.core_type = #tpu.core_type<tc>, window_params = [{transform_indices = @transform_0, window_bounds = array<i64: 8, 256>}, {transform_indices = @transform_1, window_bounds = array<i64: 8, 1>}, {transform_indices = @transform_2, window_bounds = array<i64: 8, 1>}, {transform_indices = @transform_3, window_bounds = array<i64: 8, 256>}]} {
    %c0 = arith.constant 0 : index
    %c0_0 = arith.constant 0 : index
    %0 = vector.load %arg1[%c0, %c0_0] : memref<8x256xf32, #tpu.memory_space<vmem>>, vector<8x256xf32>
    %c0_1 = arith.constant 0 : index
    %c0_2 = arith.constant 0 : index
    %1 = vector.load %arg2[%c0_1, %c0_2] : memref<8x1xf32, #tpu.memory_space<vmem>>, vector<8x1xf32>
    %2 = vector.broadcast %1 : vector<8x1xf32> to vector<8x256xf32>
    %3 = arith.mulf %0, %2 : vector<8x256xf32>
    %c0_3 = arith.constant 0 : index
    %c0_4 = arith.constant 0 : index
    %4 = vector.load %arg3[%c0_3, %c0_4] : memref<8x1xf32, #tpu.memory_space<vmem>>, vector<8x1xf32>
    %5 = vector.broadcast %4 : vector<8x1xf32> to vector<8x256xf32>
    %6 = arith.subf %3, %5 : vector<8x256xf32>
    %c0_5 = arith.constant 0 : index
    %c0_6 = arith.constant 0 : index
    %7 = vector.load %arg4[%c0_5, %c0_6] : memref<8x256xf32, #tpu.memory_space<vmem>>, vector<8x256xf32>
    tpu.vector_store %arg4[%c0_5, %c0_6], %6 {strides = array<i32>} : memref<8x256xf32, #tpu.memory_space<vmem>>, vector<8x256xf32>,
    return
  }
  func.func @transform_0(%arg0: i32) -> (i32, i32) {
    %c0_i32 = arith.constant 0 : i32
    %c0_i32_0 = arith.constant 0 : i32
    return %arg0, %c0_i32 : i32, i32
  }
  func.func @transform_1(%arg0: i32) -> (i32, i32) {
    %c0_i32 = arith.constant 0 : i32
    %c0_i32_0 = arith.constant 0 : i32
    return %arg0, %c0_i32 : i32, i32
  }
  func.func @transform_2(%arg0: i32) -> (i32, i32) {
    %c0_i32 = arith.constant 0 : i32
    %c0_i32_0 = arith.constant 0 : i32
    return %arg0, %c0_i32 : i32, i32
  }
  func.func @transform_3(%arg0: i32) -> (i32, i32) {
    %c0_i32 = arith.constant 0 : i32
    %c0_i32_0 = arith.constant 0 : i32
    return %arg0, %c0_i32 : i32, i32
  }
}

</mosaic_0001>

<bundles_post_ra>
// kernel: tile.0
= control target key start
LH: loop header
LB: loop body
LE: loop exit
PB: predicated region body
PF: predicated region fallthrough
CT: control target
= control target key end

     0   :  { %s34_s8 = smov 125   ;;  %vm7_vm0 = vcmask 7168   ;;  %s35_s11 = smov 126   ;;  %s61_s0 = inlined_call_operand.vmem [shape: f32[2,4], index: 0, kind: input, shape index: {}]   ;;  %s62_s1 = inlined_call_operand.vmem [shape: f32[8,1], index: 1, kind: output, shape index: {}]  }
   0x1   :  { %v4_v0 = vld [vmem:[%s61_s0] sm:$0x3]  ;;  %s33_s0 = smov 127  }
   0x2   :  { %5 = vst [vmem:[#allocation0] sm:$0x3] %v4_v0 }
   0x9   :  { %v9_v1 = vld [vmem:[#allocation0] sm:$0x3]  }
   0xa   :  { %v21_v2 = vld [vmem:[#allocation0] sm:$0x3]   ;;  %10 = vrot.lane.b32.xlu0 %v9_v1, %s33_s0 }
   0xb   :  { %22 = vrot.lane.b32.xlu1 %v21_v2, %s34_s8  ;;  %v6_v3 = vld [vmem:[#allocation0] sm:$0x3]  }
   0xc   :  { %v15_v4 = vld [vmem:[#allocation0] sm:$0x3]   ;;  %8 = vst.msk [vmem:[%s62_s1] ss:$4 sm:$0x3] %vm7_vm0, %v6_v3  }
   0xe   :  { %16 = vrot.lane.b32.xlu0 %v15_v4, %s35_s11 }
  0x7c   :  { %v11_v5 = vpop.permute.xlu0 %10  }
  0x7d   :  { %v23_v6 = vpop.permute.xlu1 %22   ;;  %27 = vst.msk [vmem:[%s62_s1 + $0x1] ss:$4 sm:$0x3] %vm7_vm0, %v11_v5  }
  0x7e   :  { %29 = vst.msk [vmem:[%s62_s1 + $0x3] ss:$4 sm:$0x3] %vm7_vm0, %v23_v6  }
  0x80   :  { %v17_v7 = vpop.permute.xlu0 %16  }
  0x81   :  { %28 = vst.msk [vmem:[%s62_s1 + $0x2] ss:$4 sm:$0x3] %vm7_vm0, %v17_v7  }

// kernel: tile.18
= control target key start
LH: loop header
LB: loop body
LE: loop exit
PB: predicated region body
PF: predicated region fallthrough
CT: control target
= control target key end

     0   :  { %s22_s0 = inlined_call_operand.vmem [shape: f32[4], index: 0, kind: input, shape index: {}]   ;;  %s23_s1 = inlined_call_operand.vmem [shape: f32[2,4], index: 1, kind: output, shape index: {}]  }
   0x1   :  { %v4_v0 = vld [vmem:[%s22_s0] ss:$0 sm:$0xff] }
   0x2   :  { %5 = vst [vmem:[%s23_s1] sm:$0x3] %v4_v0 }

// kernel: denormalize.1
= control target key start
LH: loop header
LB: loop body
LE: loop exit
PB: predicated region body
PF: predicated region fallthrough
CT: control target
= control target key end

     0   :  { %v40_v0 = vmov 0   ;;  %s79_s1 = inlined_call_operand.vmem [shape: f32[8,1], index: 1, kind: input, shape index: {}]   ;;  %s80_s2 = inlined_call_operand.vmem [shape: f32[8,1], index: 2, kind: input, shape index: {}]   ;;  %s81_s0 = inlined_call_operand.vmem [shape: f32[8,256], index: 0, kind: input, shape index: {}]   ;;  %s82_s3 = inlined_call_operand.vmem [shape: f32[8,256], index: 3, kind: output, shape index: {}]  }
   0x1   :  { %39 = vset.pattern.permute.xlu0 %v40_v0  ;;  %v16_v1 = vld [vmem:[%s79_s1] sm:$0xff]  ;;  %v15_v5 = vld [vmem:[%s81_s0 + $0x8] sm:$0xff] }
   0x2   :  { %19 = vperm.xlu0 %39, %v16_v1   ;;  %v24_v2 = vld [vmem:[%s80_s2] sm:$0xff] }
   0x3   :  { %v14_v4 = vld [vmem:[%s81_s0] sm:$0xff] }
   0x6   :  { %27 = vperm.xlu0 %39, %v24_v2  }
  0x81   :  { %v20_v3 = vpop.permute.xlu0 %19 }
  0x82   :  { %v22_v6 = vmul.f32 %v20_v3, %v14_v4  ;;  %v23_v7 = vmul.f32 %v20_v3, %v15_v5 }
  0x85   :  { %v28_v8 = vpop.permute.xlu0 %27 }
  0x86   :  { %v30_v9 = vsub.f32 %v22_v6, %v28_v8  ;;  %v31_v10 = vsub.f32 %v23_v7, %v28_v8 }
  0x88   :  { %32 = vst [vmem:[%s82_s3] sm:$0xff] %v30_v9  ;;  %33 = vst [vmem:[%s82_s3 + $0x8] sm:$0xff] %v31_v10 }

</bundles_post_ra>
